<compile_context>
chip_gen: v7x
topology: tpu7x:2x2x1
jax: 0.10.0
libtpu: 0.0.40
codegen_flags: <defaults>
</compile_context>

<pallas_src>
import jax
import jax.numpy as jnp
import numpy as np
from jax.experimental import pallas as pl
from jax.experimental.pallas import tpu as pltpu


def _lstm_classifier_kernel(x_ref, we_ref, be_ref, wg_ref, bg_ref,
                            wfc_ref, bfc_ref, out_ref):
    H = we_ref.shape[1]

    # embedding_proj + ReLU
    emb = jnp.dot(x_ref[...], we_ref[...],
                  preferred_element_type=jnp.float32) + be_ref[...]
    emb = jnp.maximum(emb, 0.0)

    # Single LSTM step, batch_first, seq_len == 1, h0 = c0 = 0.
    # gates = emb @ W_ih^T + (b_ih + b_hh); the W_hh @ h0 term is exactly zero.
    # One fused lane-dense (B,H)@(H,4H) matmul; PyTorch gate order i, f, g, o.
    gates = jnp.dot(emb, wg_ref[...],
                    preferred_element_type=jnp.float32) + bg_ref[...]
    i = jax.nn.sigmoid(gates[:, 0 * H:1 * H])
    # f gate skipped: c = f * c0 + i * g with c0 == 0  =>  f never contributes.
    g = jnp.tanh(gates[:, 2 * H:3 * H])
    o = jax.nn.sigmoid(gates[:, 3 * H:4 * H])

    c = i * g                 # c_prev = 0
    h = o * jnp.tanh(c)       # lstm_out.squeeze(1)

    # Dropout is identity (eval / rate=0.0); final fc layer (lane-padded output).
    out_ref[...] = jnp.dot(h, wfc_ref[...],
                           preferred_element_type=jnp.float32) + bfc_ref[...]


def lstm_classifier_forward(x, params, out_channels):
    we, be, wg, bg, wfc, bfc = params
    B, C_in = x.shape
    H = we.shape[1]
    N_pad = wfc.shape[1]

    # Batch tile: single block for small B; stream 256/512-row tiles for big B.
    if B >= 1024 and B % 512 == 0:
        TB = 512
    elif B >= 256 and B % 256 == 0:
        TB = 256
    else:
        TB = B
    grid = (B // TB,)

    const = lambda i: (0, 0)   # weights stay resident across batch tiles
    out = pl.pallas_call(
        _lstm_classifier_kernel,
        out_shape=jax.ShapeDtypeStruct((B, N_pad), jnp.float32),
        grid_spec=pltpu.PrefetchScalarGridSpec(
            num_scalar_prefetch=0,
            grid=grid,
            in_specs=[
                pl.BlockSpec((TB, C_in), lambda i: (i, 0)),   # x
                pl.BlockSpec((C_in, H), const),               # we
                pl.BlockSpec((1, H), const),                  # be
                pl.BlockSpec((H, 4 * H), const),              # packed gate weight
                pl.BlockSpec((1, 4 * H), const),              # packed gate bias
                pl.BlockSpec((H, N_pad), const),              # fc weight (lane-padded)
                pl.BlockSpec((1, N_pad), const),              # fc bias (lane-padded)
            ],
            out_specs=pl.BlockSpec((TB, N_pad), lambda i: (i, 0)),
        ),
        compiler_params=pltpu.CompilerParams(
            dimension_semantics=("parallel",)),
    )(x, we, be, wg, bg, wfc, bfc)
    return out[:, :out_channels]


def make_params(key, in_channels, hidden_channels, out_channels):
    """Deterministic synthetic parameters with PyTorch-equivalent shapes,
    pre-packed for the kernel."""
    ks = jax.random.split(key, 8)
    H = hidden_channels

    def unif(k, shape, fan):
        bound = 1.0 / np.sqrt(fan)
        return jax.random.uniform(k, shape, jnp.float32, -bound, bound)

    # nn.Linear(in_channels, H): weight (H, in), bias (H,)
    w_emb = unif(ks[0], (H, in_channels), in_channels)
    b_emb = unif(ks[1], (H,), in_channels)
    # nn.LSTM(H, H): weight_ih_l0 (4H, H), biases (4H,).  weight_hh_l0 multiplies
    # h0 == 0 for this seq_len==1 forward, so it never affects the output and is
    # intentionally not materialized.
    # TODO(synk): materialize weight_hh_l0 if this kernel is ever reused for
    # multi-step sequences (seq_len > 1 / nonzero h0).
    w_ih = unif(ks[2], (4 * H, H), H)
    b_ih = unif(ks[3], (4 * H,), H)
    b_hh = unif(ks[4], (4 * H,), H)
    # nn.Linear(H, out_channels): weight (out, H), bias (out,)
    w_fc = unif(ks[5], (out_channels, H), H)
    b_fc = unif(ks[6], (out_channels,), H)

    # --- glue: transpose / pack for lane-dense kernel matmuls ---
    we = w_emb.T                                    # (in, H)
    be = b_emb.reshape(1, H)
    wg = w_ih.T                                     # (H, 4H), columns i|f|g|o
    bg = (b_ih + b_hh).reshape(1, 4 * H)            # fold both LSTM biases
    # Lane-dense output: pad fc to the next multiple of 128 columns.
    n_pad = max(128, -(-out_channels // 128) * 128)
    wfc = jnp.zeros((H, n_pad), jnp.float32).at[:, :out_channels].set(w_fc.T)
    bfc = jnp.zeros((1, n_pad), jnp.float32).at[:, :out_channels].set(b_fc)
    return (we, be, wg, bg, wfc, bfc)


def _reference(x, params, out_channels):
    """Pure-JAX reference mirroring the PyTorch forward (including the f gate,
    which multiplies c0 == 0)."""
    we, be, wg, bg, wfc, bfc = params
    H = we.shape[1]
    emb = jnp.maximum(x @ we + be, 0.0)
    gates = emb @ wg + bg
    i = jax.nn.sigmoid(gates[:, 0 * H:1 * H])
    f = jax.nn.sigmoid(gates[:, 1 * H:2 * H])
    g = jnp.tanh(gates[:, 2 * H:3 * H])
    o = jax.nn.sigmoid(gates[:, 3 * H:4 * H])
    c = f * jnp.zeros_like(i) + i * g               # c0 == 0
    h = o * jnp.tanh(c)
    out = h @ wfc + bfc
    return out[:, :out_channels]


if __name__ == "__main__":
    B, C_IN, HIDDEN, C_OUT = 4, 16, 32, 8
    key = jax.random.PRNGKey(0)
    kx, kp = jax.random.split(key)
    x = jax.random.normal(kx, (B, C_IN), dtype=jnp.float32)
    params = make_params(kp, C_IN, HIDDEN, C_OUT)

    out = lstm_classifier_forward(x, params, C_OUT)
    out = jax.block_until_ready(out)

    ref = _reference(x, params, C_OUT)
    np.testing.assert_allclose(np.asarray(out), np.asarray(ref),
                               rtol=1e-5, atol=1e-5)
    print("KERNEL_OK")
</pallas_src>

<mosaic_0001>
module attributes {stable_mosaic.version = 11 : i64} {
  func.func @_lstm_classifier_kernel(%arg0: i32, %arg1: memref<4x16xf32, #tpu.memory_space<vmem>>, %arg2: memref<16x32xf32, #tpu.memory_space<vmem>>, %arg3: memref<1x32xf32, #tpu.memory_space<vmem>>, %arg4: memref<32x128xf32, #tpu.memory_space<vmem>>, %arg5: memref<1x128xf32, #tpu.memory_space<vmem>>, %arg6: memref<32x128xf32, #tpu.memory_space<vmem>>, %arg7: memref<1x128xf32, #tpu.memory_space<vmem>>, %arg8: memref<4x128xf32, #tpu.memory_space<vmem>>) attributes {dimension_semantics = [#tpu.dimension_semantics<parallel>], iteration_bounds = array<i64: 1>, scalar_prefetch = 0 : i64, scratch_operands = 0 : i64, tpu.core_type = #tpu.core_type<tc>, window_params = [{transform_indices = @transform_0, window_bounds = array<i64: 4, 16>}, {pipeline_mode = #tpu.pipeline_mode<synchronous>, transform_indices = @transform_1, window_bounds = array<i64: 16, 32>}, {pipeline_mode = #tpu.pipeline_mode<synchronous>, transform_indices = @transform_2, window_bounds = array<i64: 1, 32>}, {pipeline_mode = #tpu.pipeline_mode<synchronous>, transform_indices = @transform_3, window_bounds = array<i64: 32, 128>}, {pipeline_mode = #tpu.pipeline_mode<synchronous>, transform_indices = @transform_4, window_bounds = array<i64: 1, 128>}, {pipeline_mode = #tpu.pipeline_mode<synchronous>, transform_indices = @transform_5, window_bounds = array<i64: 32, 128>}, {pipeline_mode = #tpu.pipeline_mode<synchronous>, transform_indices = @transform_6, window_bounds = array<i64: 1, 128>}, {transform_indices = @transform_7, window_bounds = array<i64: 4, 128>}]} {
    %c0 = arith.constant 0 : index
    %c0_0 = arith.constant 0 : index
    %0 = vector.load %arg1[%c0, %c0_0] : memref<4x16xf32, #tpu.memory_space<vmem>>, vector<4x16xf32>
    %c0_1 = arith.constant 0 : index
    %c0_2 = arith.constant 0 : index
    %1 = vector.load %arg2[%c0_1, %c0_2] : memref<16x32xf32, #tpu.memory_space<vmem>>, vector<16x32xf32>
    %cst = arith.constant dense<0.000000e+00> : vector<4x32xf32>
    %2 = tpu.matmul %0, %1, %cst {dimension_numbers = #tpu.dot_dimension_numbers<[1], [0], [0], [1], [0, 0, 1, 1], [], []>} : vector<4x16xf32>, vector<16x32xf32>, vector<4x32xf32> -> vector<4x32xf32>
    %c0_3 = arith.constant 0 : index
    %c0_4 = arith.constant 0 : index
    %3 = vector.load %arg3[%c0_3, %c0_4] : memref<1x32xf32, #tpu.memory_space<vmem>>, vector<1x32xf32>
    %4 = vector.broadcast %3 : vector<1x32xf32> to vector<4x32xf32>
    %5 = arith.addf %2, %4 : vector<4x32xf32>
    %cst_5 = arith.constant 0.000000e+00 : f32
    %6 = vector.broadcast %cst_5 : f32 to vector<4x32xf32>
    %7 = arith.maximumf %5, %6 : vector<4x32xf32>
    %c0_6 = arith.constant 0 : index
    %c0_7 = arith.constant 0 : index
    %8 = vector.load %arg4[%c0_6, %c0_7] : memref<32x128xf32, #tpu.memory_space<vmem>>, vector<32x128xf32>
    %cst_8 = arith.constant dense<0.000000e+00> : vector<4x128xf32>
    %9 = tpu.matmul %7, %8, %cst_8 {dimension_numbers = #tpu.dot_dimension_numbers<[1], [0], [0], [1], [0, 0, 1, 1], [], []>} : vector<4x32xf32>, vector<32x128xf32>, vector<4x128xf32> -> vector<4x128xf32>
    %c0_9 = arith.constant 0 : index
    %c0_10 = arith.constant 0 : index
    %10 = vector.load %arg5[%c0_9, %c0_10] : memref<1x128xf32, #tpu.memory_space<vmem>>, vector<1x128xf32>
    %11 = vector.broadcast %10 : vector<1x128xf32> to vector<4x128xf32>
    %12 = arith.addf %9, %11 : vector<4x128xf32>
    %13 = vector.extract_strided_slice %12 {offsets = [0, 0], sizes = [4, 32], strides = [1, 1]} : vector<4x128xf32> to vector<4x32xf32>
    %14 = arith.negf %13 : vector<4x32xf32>
    %15 = math.exp %14 : vector<4x32xf32>
    %cst_11 = arith.constant 1.000000e+00 : f32
    %16 = vector.broadcast %cst_11 : f32 to vector<4x32xf32>
    %17 = arith.addf %16, %15 : vector<4x32xf32>
    %18 = arith.divf %16, %17 : vector<4x32xf32>
    %19 = vector.extract_strided_slice %12 {offsets = [0, 64], sizes = [4, 32], strides = [1, 1]} : vector<4x128xf32> to vector<4x32xf32>
    %20 = math.tanh %19 : vector<4x32xf32>
    %21 = vector.extract_strided_slice %12 {offsets = [0, 96], sizes = [4, 32], strides = [1, 1]} : vector<4x128xf32> to vector<4x32xf32>
    %22 = arith.negf %21 : vector<4x32xf32>
    %23 = math.exp %22 : vector<4x32xf32>
    %cst_12 = arith.constant 1.000000e+00 : f32
    %24 = vector.broadcast %cst_12 : f32 to vector<4x32xf32>
    %25 = arith.addf %24, %23 : vector<4x32xf32>
    %26 = arith.divf %24, %25 : vector<4x32xf32>
    %27 = arith.mulf %18, %20 : vector<4x32xf32>
    %28 = math.tanh %27 : vector<4x32xf32>
    %29 = arith.mulf %26, %28 : vector<4x32xf32>
    %c0_13 = arith.constant 0 : index
    %c0_14 = arith.constant 0 : index
    %30 = vector.load %arg6[%c0_13, %c0_14] : memref<32x128xf32, #tpu.memory_space<vmem>>, vector<32x128xf32>
    %cst_15 = arith.constant dense<0.000000e+00> : vector<4x128xf32>
    %31 = tpu.matmul %29, %30, %cst_15 {dimension_numbers = #tpu.dot_dimension_numbers<[1], [0], [0], [1], [0, 0, 1, 1], [], []>} : vector<4x32xf32>, vector<32x128xf32>, vector<4x128xf32> -> vector<4x128xf32>
    %c0_16 = arith.constant 0 : index
    %c0_17 = arith.constant 0 : index
    %32 = vector.load %arg7[%c0_16, %c0_17] : memref<1x128xf32, #tpu.memory_space<vmem>>, vector<1x128xf32>
    %33 = vector.broadcast %32 : vector<1x128xf32> to vector<4x128xf32>
    %34 = arith.addf %31, %33 : vector<4x128xf32>
    %c0_18 = arith.constant 0 : index
    %c0_19 = arith.constant 0 : index
    %35 = vector.load %arg8[%c0_18, %c0_19] : memref<4x128xf32, #tpu.memory_space<vmem>>, vector<4x128xf32>
    tpu.vector_store %arg8[%c0_18, %c0_19], %34 {strides = array<i32>} : memref<4x128xf32, #tpu.memory_space<vmem>>, vector<4x128xf32>,
    return
  }
  func.func @transform_0(%arg0: i32) -> (i32, i32) {
    %c0_i32 = arith.constant 0 : i32
    %c0_i32_0 = arith.constant 0 : i32
    return %arg0, %c0_i32 : i32, i32
  }
  func.func @transform_1(%arg0: i32) -> (i32, i32) {
    %c0_i32 = arith.constant 0 : i32
    %c0_i32_0 = arith.constant 0 : i32
    %c0_i32_1 = arith.constant 0 : i32
    return %c0_i32, %c0_i32_0 : i32, i32
  }
  func.func @transform_2(%arg0: i32) -> (i32, i32) {
    %c0_i32 = arith.constant 0 : i32
    %c0_i32_0 = arith.constant 0 : i32
    %c0_i32_1 = arith.constant 0 : i32
    return %c0_i32, %c0_i32_0 : i32, i32
  }
  func.func @transform_3(%arg0: i32) -> (i32, i32) {
    %c0_i32 = arith.constant 0 : i32
    %c0_i32_0 = arith.constant 0 : i32
    %c0_i32_1 = arith.constant 0 : i32
    return %c0_i32, %c0_i32_0 : i32, i32
  }
  func.func @transform_4(%arg0: i32) -> (i32, i32) {
    %c0_i32 = arith.constant 0 : i32
    %c0_i32_0 = arith.constant 0 : i32
    %c0_i32_1 = arith.constant 0 : i32
    return %c0_i32, %c0_i32_0 : i32, i32
  }
  func.func @transform_5(%arg0: i32) -> (i32, i32) {
    %c0_i32 = arith.constant 0 : i32
    %c0_i32_0 = arith.constant 0 : i32
    %c0_i32_1 = arith.constant 0 : i32
    return %c0_i32, %c0_i32_0 : i32, i32
  }
  func.func @transform_6(%arg0: i32) -> (i32, i32) {
    %c0_i32 = arith.constant 0 : i32
    %c0_i32_0 = arith.constant 0 : i32
    %c0_i32_1 = arith.constant 0 : i32
    return %c0_i32, %c0_i32_0 : i32, i32
  }
  func.func @transform_7(%arg0: i32) -> (i32, i32) {
    %c0_i32 = arith.constant 0 : i32
    %c0_i32_0 = arith.constant 0 : i32
    return %arg0, %c0_i32 : i32, i32
  }
}

</mosaic_0001>

<bundles_post_ra>
// kernel: tpu_custom_call.1
= control target key start
LH: loop header
LB: loop body
LE: loop exit
PB: predicated region body
PF: predicated region fallthrough
CT: control target
= control target key end

     0   :  { %12 = vsyncpa [#allocation3], 0  ;;  %s711_s0 = inlined_call_operand.hbm [shape: f32[4,16], index: 0, kind: input, shape index: {}]   ;;  %s712_s1 = inlined_call_operand.hbm [shape: f32[16,32], index: 1, kind: input, shape index: {}]   ;;  %s713_s2 = inlined_call_operand.vmem [shape: f32[1,32], index: 2, kind: input, shape index: {}]   ;;  %s714_s3 = inlined_call_operand.hbm [shape: f32[32,128], index: 3, kind: input, shape index: {}]   ;;  %s715_s4 = inlined_call_operand.vmem [shape: f32[1,128], index: 4, kind: input, shape index: {}]   ;;  %s716_s5 = inlined_call_operand.hbm [shape: f32[32,128], index: 5, kind: input, shape index: {}]   ;;  %s717_s6 = inlined_call_operand.vmem [shape: f32[1,128], index: 6, kind: input, shape index: {}]   ;;  %s718_s7 = inlined_call_operand.hbm [shape: f32[4,128], index: 7, kind: output, shape index: {}]  }
   0x1   :  { %13 = vsyncpa [#allocation6], 0 }
   0x2   :  { %14 = vsyncpa [#allocation9], 0 }
   0x3   :  { %15 = vsyncpa [#allocation4], 0  ;;  %s575_s24 = smov [#allocation5]   ;;  %s457_s28 = scalar_lea.hbm %s712_s1, 256 }
   0x4   :  { %s31_s25 = sshll.u32 %s575_s24, 4  ;;  %p458_p0 = scmp.ne.s32.totalorder %s712_s1, %s457_s28  ;;  %s32_s25 = int_to_ptr.vmem [resolvable:$true] %s31_s25 }
   0x5   :  { %p461_p1 = scmp.lt.u32.totalorder %s457_s28, %s712_s1 }
   0x7   :  { %p463_p2 = pnand %p461_p1, %p458_p0 }
   0x9   :  { %466 = shalt.err (!%p463_p2)
}
   0xa   :  { %s467_s10 = scalar_lea.vmem %s32_s25, 256  ;;  %p472_p4 = scmp.lt.s32.totalorder %s32_s25, %s32_s25 }
   0xb   :  { %p468_p3 = scmp.ne.s32.totalorder %s32_s25, %s467_s10  ;;  %p473_p5 = scmp.lt.s32.totalorder %s467_s10, %s467_s10 }
   0xd   :  { %p474_p6 = por %p473_p5, %p472_p4 }
   0xf   :  { %p475_p7 = pnand %p474_p6, %p468_p3 }
  0x11   :  { %478 = shalt.err (!%p475_p7)
}
  0x12   :  { %s576_s11 = smov 128   ;;  %s577_s12 = smov 8  }
  0x13   :  { %37 = dma.hbm_to_vmem [thread:$0]  %s712_s1, 256, %s32_s25, [#allocation6], %s576_s11, %s576_s11, %s577_s12  }
  0x14   :  { %s578_s15 = smov [#allocation2]   ;;  %s579_s17 = smov [#allocation7]  }
  0x15   :  { %s22_s16 = sshll.u32 %s578_s15, 4  ;;  %s45_s18 = sshll.u32 %s579_s17, 4  ;;  %s23_s16 = int_to_ptr.vmem [resolvable:$true] %s22_s16  ;;  %s46_s18 = int_to_ptr.vmem [resolvable:$true] %s45_s18 }
  0x16   :  { %s479_s21 = scalar_lea.hbm %s711_s0, 64 }
  0x17   :  { %p480_p8 = scmp.ne.s32.totalorder %s711_s0, %s479_s21  ;;  %p483_p9 = scmp.lt.u32.totalorder %s479_s21, %s711_s0 }
  0x19   :  { %p485_p10 = pnand %p483_p9, %p480_p8 }
  0x1b   :  { %488 = shalt.err (!%p485_p10)
}
  0x1c   :  { %s489_s1 = scalar_lea.vmem %s23_s16, 64  ;;  %p494_p12 = scmp.lt.s32.totalorder %s23_s16, %s23_s16 }
  0x1d   :  { %p490_p11 = scmp.ne.s32.totalorder %s23_s16, %s489_s1  ;;  %p495_p13 = scmp.lt.s32.totalorder %s489_s1, %s489_s1 }
  0x1f   :  { %p496_p0 = por %p495_p13, %p494_p12 }
  0x21   :  { %p497_p1 = pnand %p496_p0, %p490_p11 }
  0x23   :  { %500 = shalt.err (!%p497_p1)
}
  0x24   :  { %25 = dma.hbm_to_vmem [thread:$0]  %s711_s0, 64, %s23_s16, [#allocation3]  }
  0x25   :  { %s501_s30 = scalar_lea.hbm %s714_s3, 512 }
  0x26   :  { %p502_p2 = scmp.ne.s32.totalorder %s714_s3, %s501_s30  ;;  %p505_p3 = scmp.lt.u32.totalorder %s501_s30, %s714_s3 }
  0x28   :  { %p507_p4 = pnand %p505_p3, %p502_p2 }
  0x2a   :  { %510 = shalt.err (!%p507_p4)
}
  0x2b   :  { %s511_s14 = scalar_lea.vmem %s46_s18, 512  ;;  %p516_p6 = scmp.lt.s32.totalorder %s46_s18, %s46_s18 }
  0x2c   :  { %p512_p5 = scmp.ne.s32.totalorder %s46_s18, %s511_s14  ;;  %p517_p7 = scmp.lt.s32.totalorder %s511_s14, %s511_s14 }
  0x2e   :  { %p518_p8 = por %p517_p7, %p516_p6 }
  0x30   :  { %p519_p9 = pnand %p518_p8, %p512_p5 }
  0x32   :  { %522 = shalt.err (!%p519_p9)
}
  0x33   :  { %51 = dma.hbm_to_vmem [thread:$0]  %s714_s3, 512, %s46_s18, [#allocation6], %s576_s11, %s576_s11, %s577_s12  }
  0x34   :  { %s580_s16 = smov [#allocation8]   ;;  %s523_s21 = scalar_lea.hbm %s716_s5, 512 }
  0x35   :  { %s59_s17 = sshll.u32 %s580_s16, 4  ;;  %p524_p10 = scmp.ne.s32.totalorder %s716_s5, %s523_s21  ;;  %s60_s17 = int_to_ptr.vmem [resolvable:$true] %s59_s17 }
  0x36   :  { %p527_p11 = scmp.lt.u32.totalorder %s523_s21, %s716_s5 }
  0x38   :  { %p529_p12 = pnand %p527_p11, %p524_p10 }
  0x3a   :  { %532 = shalt.err (!%p529_p12)
}
  0x3b   :  { %s533_s1 = scalar_lea.vmem %s60_s17, 512  ;;  %p538_p0 = scmp.lt.s32.totalorder %s60_s17, %s60_s17 }
  0x3c   :  { %p534_p13 = scmp.ne.s32.totalorder %s60_s17, %s533_s1  ;;  %p539_p1 = scmp.lt.s32.totalorder %s533_s1, %s533_s1 }
  0x3e   :  { %p540_p2 = por %p539_p1, %p538_p0 }
  0x40   :  { %p541_p3 = pnand %p540_p2, %p534_p13 }
  0x42   :  { %544 = shalt.err (!%p541_p3)
}
  0x43   :  { %65 = dma.hbm_to_vmem [thread:$0]  %s716_s5, 512, %s60_s17, [#allocation9], %s576_s11, %s576_s11, %s577_s12  }
  0x44   :  { %567 = dma.done.wait [#allocation3], 64  }
  0x45   :  { %568 = vsyncadd [#allocation3], 4294967232 }
  0x46   :  { %569 = dma.done.wait [#allocation6], 768  }
  0x47   :  { %570 = vsyncadd [#allocation6], 4294966528 }
  0x48   :  { %571 = dma.done.wait [#allocation9], 512  }
  0x49   :  { %572 = vsyncadd [#allocation9], 4294966784  ;;  %v581_v0 = vmov 0.0|0.0   ;;  %vm582_vm0 = vmmov 0   ;;  %v583_v1 = vmov 0.0   ;;  %v81_v2 = vld [vmem:[#allocation5] sm:$0xff] }
  0x4a   :  { %421 = vmatprep.subr.bf16.mxu0 %v581_v0  ;;  %396 = vmatprep.mubr.msk.f32.mxu0 %vm582_vm0, %v583_v1  ;;  %v82_v3 = vld [vmem:[#allocation5 + $0x8] sm:$0xff]  ;;  %v165_v5 = vld [vmem:[#allocation7] sm:$0xff]  ;;  %v166_v6 = vld [vmem:[#allocation7 + $0x8] sm:$0xff]  ;;  %vm90_vm1 = vcmask 130048   ;;  %vm176_vm2 = vcmask 261120   ;;  %s584_s27 = smov 64  }
  0x4b   :  { %424 = vmatprep.subr.bf16.mxu1 %v581_v0  ;;  %407 = vmatprep.mubr.msk.f32.mxu1 %vm582_vm0, %v583_v1  ;;  %v422_v4 = vpack.c.bf16 %v82_v3, %v81_v2  ;;  %v425_v7 = vpack.c.bf16 %v166_v6, %v165_v5  ;;  %v80_v8 = vld [vmem:[#allocation2] sm:$0xf]  ;;  %v167_v9 = vld [vmem:[#allocation7 + $0x10] sm:$0xff]  ;;  %v168_v10 = vld [vmem:[#allocation7 + $0x18] sm:$0xff]  ;;  %s587_s30 = smov [#allocation10]  }
  0x4c   :  { %v428_v11 = vpack.c.bf16 %v168_v10, %v167_v9  ;;  %v372_v12 = vld [vmem:[%s713_s2] ss:$0 sm:$0xff]  ;;  %v268_v28 = vld [vmem:[#allocation8] sm:$0xff]  ;;  %v270_v30 = vld [vmem:[#allocation8 + $0x10] sm:$0xff]  ;;  %s585_s2 = smov 96   ;;  %s361_s8 = sshll.u32 %s587_s30, 4  ;;  %s362_s8 = int_to_ptr.vmem [resolvable:$true] %s361_s8 }
  0x4d   :  { %423 = vmatpush3.bf16.msra.mxu0 %v422_v4  ;;  %426 = vmatpush3.bf16.msra.mxu1 %v425_v7  ;;  %v374_v17 = vld [vmem:[%s715_s4] ss:$0 sm:$0xff]  ;;  %v271_v32 = vld [vmem:[#allocation8 + $0x18] sm:$0xff]  ;;  %s586_s4 = smov 32   ;;  %s545_s9 = scalar_lea.vmem %s362_s8, 64 }
  0x4e   :  { %430 = vmatprep.subr.bf16.mxu0 %v581_v0  ;;  %427 = vmatprep.subr.bf16.mxu1 %v581_v0  ;;  %v269_v29 = vld [vmem:[#allocation8 + $0x8] sm:$0xff]  ;;  %v434_v33 = vpack.c.bf16 %v271_v32, %v270_v30  ;;  %p546_p4 = scmp.ne.s32.totalorder %s362_s8, %s545_s9  ;;  %p550_p5 = scmp.lt.s32.totalorder %s362_s8, %s362_s8 }
  0x4f   :  { %v431_v31 = vpack.c.bf16 %v269_v29, %v268_v28  ;;  %v377_v38 = vld [vmem:[%s717_s6] ss:$0 sm:$0xff]  ;;  %p551_p6 = scmp.lt.s32.totalorder %s545_s9, %s545_s9 }
  0x50   :  { %397 = vmatmul.mubr.msk.f32.vlgmr.msra.gmra.mrb[0].mxu0 %vm90_vm1, %v80_v8 }
  0x51   :  { %418 = vmatprep.mubr.msk.f32.mxu0 %vm582_vm0, %v583_v1  ;;  %429 = vmatpush3.bf16.msra.mxu1 %v428_v11  ;;  %p552_p7 = por %p551_p6, %p550_p5 }
  0x52   :  { %432 = vmatpush3.bf16.msra.mxu0 %v431_v31 }
  0x53   :  { %433 = vmatprep.subr.bf16.mxu0 %v581_v0  ;;  %p553_p8 = pnand %p552_p7, %p546_p4 }
  0x56   :  { %435 = vmatpush3.bf16.msra.mxu0 %v434_v33 }
 0x123   :  { %v160_v13 = vpop.f32.mrb[0].mxu0 }
 0x124   :  { %v161_v14 = vadd.f32 %v372_v12, %v160_v13  ;;  %v398_v15 = vpop.f32.mrb[1].mxu0 }
 0x126   :  { %v164_v16 = vmax.f32 %v161_v14, 0.0 }
 0x128   :  { %408 = vmatmul.mubr.msk.f32.vlgmr.msra.gmra.mrb[0].mxu1 %vm176_vm2, %v164_v16 }
 0x1fb   :  { %v246_v18 = vpop.f32.mrb[0].mxu1 }
 0x1fc   :  { %v247_v19 = vadd.f32 %v374_v17, %v246_v18  ;;  %v409_v20 = vpop.f32.mrb[1].mxu1 }
 0x1fe   :  { %449 = vtanh.f32 %v247_v19  ;;  %v376_v22 = vmul.f32 -1.442695, %v247_v19 }
 0x200   :  { %451 = vpow2.f32 %v376_v22 }
 0x208   :  { %v450_v21 = vpop.eup %449 }
 0x209   :  { %258 = vrot.lane.b32.xlu0 %v450_v21, %s584_s27 }
 0x20a   :  { %v452_v23 = vpop.eup %451 }
 0x20b   :  { %v253_v24 = vadd.f32 1.0, %v452_v23 }
 0x20d   :  { %453 = vrcp.f32 %v253_v24 }
 0x217   :  { %v454_v25 = vpop.eup %453 }
 0x27b   :  { %v259_v26 = vpop.permute.xlu0 %258 }
 0x27c   :  { %v261_v27 = vmul.f32 %v454_v25, %v259_v26 }
 0x27e   :  { %455 = vtanh.f32 %v261_v27 }
 0x288   :  { %v456_v34 = vpop.eup %455 }
 0x289   :  { %264 = vrot.lane.b32.xlu0 %v456_v34, %s585_s2 }
 0x2fb   :  { %v265_v35 = vpop.permute.xlu0 %264 }
 0x2fc   :  { %v267_v36 = vmul.f32 %v454_v25, %v265_v35 }
 0x2fe   :  { %280 = vrot.lane.b32.xlu1 %v267_v36, %s586_s4 }
 0x370   :  { %v281_v37 = vpop.permute.xlu1 %280 }
 0x371   :  { %419 = vmatmul.mubr.msk.f32.vlgmr.msra.gmra.mrb[2].mxu0 %vm176_vm2, %v281_v37 }
 0x444   :  { %v350_v39 = vpop.f32.mrb[2].mxu0 }
 0x445   :  { %v351_v40 = vadd.f32 %v377_v38, %v350_v39  ;;  %v420_v41 = vpop.f32.mrb[3].mxu0 }
 0x447   :  { %354 = vst [vmem:[#allocation10] sm:$0xf] %v351_v40 }
 0x448   :  { %556 = shalt.err (!%p553_p8)
}
 0x449   :  { %s557_s14 = scalar_lea.hbm %s718_s7, 64 }
 0x44a   :  { %p558_p9 = scmp.ne.s32.totalorder %s718_s7, %s557_s14  ;;  %p561_p10 = scmp.lt.u32.totalorder %s557_s14, %s718_s7 }
 0x44c   :  { %p563_p11 = pnand %p561_p10, %p558_p9 }
 0x44e   :  { %566 = shalt.err (!%p563_p11)
}
 0x44f   :  { %364 = dma.vmem_to_hbm [thread:$0]  %s362_s8, 64, %s718_s7, [#allocation4]  }
 0x450   :  { %573 = dma.done.wait [#allocation4], 64  }
 0x451   :  { %574 = vsyncadd [#allocation4], 4294967232 }
 0x452   :  { %368 = vsyncpa [#allocation3], 1 }
 0x453   :  { %369 = vsyncpa [#allocation6], 1 }
 0x454   :  { %370 = vsyncpa [#allocation9], 1 }
 0x455   :  { %371 = vsyncpa [#allocation4], 1 }

</bundles_post_ra>
